<compile_context>
chip_gen: v5e
topology: v5e:2x2
jax: 0.10.0
libtpu: 0.0.40
codegen_flags: <defaults>
</compile_context>

<pallas_src>
import jax
import jax.numpy as jnp
from jax.experimental import pallas as pl
from jax.experimental.pallas import tpu as pltpu


# ---------------------------------------------------------------------------
# Fused kernel
# ---------------------------------------------------------------------------
def _make_fused_kernel(n_layers, batch, xs_in, c_ns):
    """Fused forward kernel for a fixed architecture.

    Kernel refs: (u_ref, [A_blk, A_swp, M, bias_pk] * n_layers, out_ref)
      u_ref     : (B * m_x0, 2 * c_m0)         rows: batch blocks; lanes [r|i]
      A_blk_l   : (2 * c_m_l, 2 * c_n_l)       [[Ar, Ai], [-Ai, Ar]]
      A_swp_l   : (2 * c_m_l, 2 * c_n_l)       [[-Ai, Ar], [-Ar, -Ai]]
      M_l       : (B * n_x_l, 2 * B * m_x_l)   [blockdiag_B(Br) | blockdiag_B(Bi)]
      bias_pk_l : (B * n_x_l, 2 * c_n_l)       [br | bi] tiled over batch rows
      out_ref   : (B * n_x_last, 2 * c_n_last)
    """

    def kernel(*refs):
        u_ref = refs[0]
        out_ref = refs[-1]
        w_refs = refs[1:-1]

        U = u_ref[...]  # (B*x, 2c)

        for l in range(n_layers):
            a_ref, aswp_ref, m_ref, bias_ref = w_refs[4 * l: 4 * l + 4]

            # --- channel mix: two block-complex matmuls over the whole batch.
            V = jnp.dot(U, a_ref[...], preferred_element_type=jnp.float32)
            Vs = jnp.dot(U, aswp_ref[...], preferred_element_type=jnp.float32)

            # --- stack [V ; Vswap] along sublanes (rows are multiples of 8).
            V_big = jnp.concatenate([V, Vs], axis=0)  # (2*B*x, 2d)

            # --- mode mix: one block-complex matmul for the whole batch + bias.
            W = jnp.dot(m_ref[...], V_big,
                        preferred_element_type=jnp.float32) + bias_ref[...]

            if l < n_layers - 1:
                # TODO(synk): torch's nn.ReLU() is undefined for complex
                # tensors; ReLU is applied to real and imaginary parts
                # independently (elementwise max on the packed layout).
                W = jnp.maximum(W, 0.0)

            U = W

        out_ref[...] = U

    return kernel


# ---------------------------------------------------------------------------
# Wrapper: weight packing (hoisted, once per forward) + single pallas_call
# ---------------------------------------------------------------------------
def _pack_params(params, batch):
    packed = []
    for (Br, Bi, Ar, Ai, br, bi) in params:
        # Channel mix: [Vr|Vi] = [Ur|Ui] @ [[Ar, Ai], [-Ai, Ar]]
        A_blk = jnp.concatenate(
            [jnp.concatenate([Ar, Ai], axis=1),
             jnp.concatenate([-Ai, Ar], axis=1)], axis=0)          # (2c, 2d)
        # Swap form: [-Vi|Vr] = [Ur|Ui] @ [[-Ai, Ar], [-Ar, -Ai]]
        A_swp = jnp.concatenate(
            [jnp.concatenate([-Ai, Ar], axis=1),
             jnp.concatenate([-Ar, -Ai], axis=1)], axis=0)         # (2c, 2d)
        # Mode mix: W = [blockdiag(Br) | blockdiag(Bi)] @ [V ; Vswap]
        eyeB = jnp.eye(batch, dtype=Br.dtype)
        M = jnp.concatenate(
            [jnp.kron(eyeB, Br), jnp.kron(eyeB, Bi)], axis=1)      # (B*y, 2*B*x)
        # Bias, tiled over batch row blocks.
        bias_pk = jnp.tile(jnp.concatenate([br, bi], axis=1),
                           (batch, 1))                             # (B*y, 2d)
        packed.append((A_blk, A_swp, M, bias_pk))
    return packed


def nn_i_forward(Ur, Ui, params):
    """Full NN_i forward: (B, m_x0, c_m0) real+imag -> (B, n_x_L, c_n_L)."""
    Bn, x0, c0 = Ur.shape
    n_layers = len(params)
    xs_in = tuple(p[0].shape[1] for p in params)   # m_x per layer (B is (n_x, m_x))
    c_ns = tuple(p[2].shape[1] for p in params)    # c_n per layer (A is (c_m, c_n))
    y_last = params[-1][0].shape[0]
    d_last = c_ns[-1]

    packed = _pack_params(params, Bn)
    flat_w = [w for layer in packed for w in layer]

    # Pack input: (B, x, c) real/imag -> (B*x, 2c); batch-major row blocks.
    U_pk = jnp.concatenate([Ur, Ui], axis=-1).reshape(Bn * x0, 2 * c0)

    kernel = _make_fused_kernel(n_layers, Bn, xs_in, c_ns)

    n_in = 1 + len(flat_w)
    vmem_spec = pl.BlockSpec(memory_space=pltpu.MemorySpace.VMEM)

    out = pl.pallas_call(
        kernel,
        out_shape=jax.ShapeDtypeStruct((Bn * y_last, 2 * d_last), jnp.float32),
        in_specs=[vmem_spec] * n_in,
        out_specs=vmem_spec,
    )(U_pk, *flat_w)

    # Unpack: (B*y, 2d) -> (B, y, d) real and imag.
    o = out.reshape(Bn, y_last, 2 * d_last)
    Yr = o[..., :d_last]
    Yi = o[..., d_last:]
    return Yr, Yi


# ---------------------------------------------------------------------------
# Parameter init (deterministic analogue of NN_i.init_i_network_params)
# ---------------------------------------------------------------------------
def init_nn_i_params(sizes, key):
    params = []
    for (m_x, n_x), (c_m, c_n) in zip(zip(sizes[0][:-1], sizes[0][1:]),
                                      zip(sizes[1][:-1], sizes[1][1:])):
        key, *ks = jax.random.split(key, 7)
        p0 = jax.random.normal(ks[0], (n_x, m_x), jnp.float32) / m_x   # Re(B)
        p1 = jax.random.normal(ks[1], (n_x, m_x), jnp.float32) / m_x   # Im(B)
        p2 = jax.random.normal(ks[2], (c_m, c_n), jnp.float32) / c_m   # Re(A)
        p3 = jax.random.normal(ks[3], (c_m, c_n), jnp.float32) / c_m   # Im(A)
        p4 = jax.random.normal(ks[4], (n_x, c_n), jnp.float32)         # Re(b)
        p5 = jax.random.normal(ks[5], (n_x, c_n), jnp.float32)         # Im(b)
        params.append((p0, p1, p2, p3, p4, p5))
    return params


def nn_i_reference(Uc, params):
    """Pure-JAX complex reference (mirrors the PyTorch forward)."""
    n = len(params)
    for i, (p0, p1, p2, p3, p4, p5) in enumerate(params):
        A = p2 + 1j * p3
        B = p0 + 1j * p1
        b = p4 + 1j * p5
        Uc = jnp.einsum('bxc,cd->bxd', Uc, A)
        Uc = jnp.einsum('yx,bxc->byc', B, Uc)
        Uc = Uc + b
        if i < n - 1:
            Uc = jnp.maximum(Uc.real, 0.0) + 1j * jnp.maximum(Uc.imag, 0.0)
    return Uc


if __name__ == "__main__":
    # sizes = (mode sizes, channel sizes) -> 2 layers
    sizes = ([16, 32, 16], [8, 16, 8])
    batch = 2

    key = jax.random.PRNGKey(0)
    kp, kur, kui = jax.random.split(key, 3)
    params = init_nn_i_params(sizes, kp)

    m_x0, c_m0 = sizes[0][0], sizes[1][0]
    Ur = jax.random.normal(kur, (batch, m_x0, c_m0), jnp.float32)
    Ui = jax.random.normal(kui, (batch, m_x0, c_m0), jnp.float32)

    fwd = jax.jit(nn_i_forward)
    Yr, Yi = fwd(Ur, Ui, params)
    Yr, Yi = jax.block_until_ready((Yr, Yi))

    # Sanity check vs. pure-JAX complex reference.
    Yref = nn_i_reference(Ur + 1j * Ui, params)
    assert jnp.allclose(Yr, Yref.real, atol=1e-3, rtol=1e-3)
    assert jnp.allclose(Yi, Yref.imag, atol=1e-3, rtol=1e-3)

    print("KERNEL_OK")
</pallas_src>

<mosaic_0001>
module attributes {stable_mosaic.version = 11 : i64} {
  func.func @kernel(%arg0: memref<32x16xf32, #tpu.memory_space<vmem>>, %arg1: memref<16x32xf32, #tpu.memory_space<vmem>>, %arg2: memref<16x32xf32, #tpu.memory_space<vmem>>, %arg3: memref<64x64xf32, #tpu.memory_space<vmem>>, %arg4: memref<64x32xf32, #tpu.memory_space<vmem>>, %arg5: memref<32x16xf32, #tpu.memory_space<vmem>>, %arg6: memref<32x16xf32, #tpu.memory_space<vmem>>, %arg7: memref<32x128xf32, #tpu.memory_space<vmem>>, %arg8: memref<32x16xf32, #tpu.memory_space<vmem>>, %arg9: memref<32x16xf32, #tpu.memory_space<vmem>>) attributes {dimension_semantics = [], scalar_prefetch = 0 : i64, scratch_operands = 0 : i64, tpu.core_type = #tpu.core_type<tc>} {
    %c0 = arith.constant 0 : index
    %c0_0 = arith.constant 0 : index
    %0 = vector.load %arg0[%c0, %c0_0] : memref<32x16xf32, #tpu.memory_space<vmem>>, vector<32x16xf32>
    %c0_1 = arith.constant 0 : index
    %c0_2 = arith.constant 0 : index
    %1 = vector.load %arg1[%c0_1, %c0_2] : memref<16x32xf32, #tpu.memory_space<vmem>>, vector<16x32xf32>
    %cst = arith.constant dense<0.000000e+00> : vector<32x32xf32>
    %2 = tpu.matmul %0, %1, %cst {dimension_numbers = #tpu.dot_dimension_numbers<[1], [0], [0], [1], [0, 0, 1, 1], [], []>} : vector<32x16xf32>, vector<16x32xf32>, vector<32x32xf32> -> vector<32x32xf32>
    %c0_3 = arith.constant 0 : index
    %c0_4 = arith.constant 0 : index
    %3 = vector.load %arg2[%c0_3, %c0_4] : memref<16x32xf32, #tpu.memory_space<vmem>>, vector<16x32xf32>
    %cst_5 = arith.constant dense<0.000000e+00> : vector<32x32xf32>
    %4 = tpu.matmul %0, %3, %cst_5 {dimension_numbers = #tpu.dot_dimension_numbers<[1], [0], [0], [1], [0, 0, 1, 1], [], []>} : vector<32x16xf32>, vector<16x32xf32>, vector<32x32xf32> -> vector<32x32xf32>
    %5 = tpu.concatenate %2, %4 in 0 : vector<32x32xf32>, vector<32x32xf32> -> vector<64x32xf32>
    %c0_6 = arith.constant 0 : index
    %c0_7 = arith.constant 0 : index
    %6 = vector.load %arg3[%c0_6, %c0_7] : memref<64x64xf32, #tpu.memory_space<vmem>>, vector<64x64xf32>
    %cst_8 = arith.constant dense<0.000000e+00> : vector<64x32xf32>
    %7 = tpu.matmul %6, %5, %cst_8 {dimension_numbers = #tpu.dot_dimension_numbers<[1], [0], [0], [1], [0, 0, 1, 1], [], []>} : vector<64x64xf32>, vector<64x32xf32>, vector<64x32xf32> -> vector<64x32xf32>
    %c0_9 = arith.constant 0 : index
    %c0_10 = arith.constant 0 : index
    %8 = vector.load %arg4[%c0_9, %c0_10] : memref<64x32xf32, #tpu.memory_space<vmem>>, vector<64x32xf32>
    %9 = arith.addf %7, %8 : vector<64x32xf32>
    %cst_11 = arith.constant 0.000000e+00 : f32
    %10 = vector.broadcast %cst_11 : f32 to vector<64x32xf32>
    %11 = arith.maximumf %9, %10 : vector<64x32xf32>
    %c0_12 = arith.constant 0 : index
    %c0_13 = arith.constant 0 : index
    %12 = vector.load %arg5[%c0_12, %c0_13] : memref<32x16xf32, #tpu.memory_space<vmem>>, vector<32x16xf32>
    %cst_14 = arith.constant dense<0.000000e+00> : vector<64x16xf32>
    %13 = tpu.matmul %11, %12, %cst_14 {dimension_numbers = #tpu.dot_dimension_numbers<[1], [0], [0], [1], [0, 0, 1, 1], [], []>} : vector<64x32xf32>, vector<32x16xf32>, vector<64x16xf32> -> vector<64x16xf32>
    %c0_15 = arith.constant 0 : index
    %c0_16 = arith.constant 0 : index
    %14 = vector.load %arg6[%c0_15, %c0_16] : memref<32x16xf32, #tpu.memory_space<vmem>>, vector<32x16xf32>
    %cst_17 = arith.constant dense<0.000000e+00> : vector<64x16xf32>
    %15 = tpu.matmul %11, %14, %cst_17 {dimension_numbers = #tpu.dot_dimension_numbers<[1], [0], [0], [1], [0, 0, 1, 1], [], []>} : vector<64x32xf32>, vector<32x16xf32>, vector<64x16xf32> -> vector<64x16xf32>
    %16 = tpu.concatenate %13, %15 in 0 : vector<64x16xf32>, vector<64x16xf32> -> vector<128x16xf32>
    %c0_18 = arith.constant 0 : index
    %c0_19 = arith.constant 0 : index
    %17 = vector.load %arg7[%c0_18, %c0_19] : memref<32x128xf32, #tpu.memory_space<vmem>>, vector<32x128xf32>
    %cst_20 = arith.constant dense<0.000000e+00> : vector<32x16xf32>
    %18 = tpu.matmul %17, %16, %cst_20 {dimension_numbers = #tpu.dot_dimension_numbers<[1], [0], [0], [1], [0, 0, 1, 1], [], []>} : vector<32x128xf32>, vector<128x16xf32>, vector<32x16xf32> -> vector<32x16xf32>
    %c0_21 = arith.constant 0 : index
    %c0_22 = arith.constant 0 : index
    %19 = vector.load %arg8[%c0_21, %c0_22] : memref<32x16xf32, #tpu.memory_space<vmem>>, vector<32x16xf32>
    %20 = arith.addf %18, %19 : vector<32x16xf32>
    %c0_23 = arith.constant 0 : index
    %c0_24 = arith.constant 0 : index
    %21 = vector.load %arg9[%c0_23, %c0_24] : memref<32x16xf32, #tpu.memory_space<vmem>>, vector<32x16xf32>
    tpu.vector_store %arg9[%c0_23, %c0_24], %20 {strides = array<i32>} : memref<32x16xf32, #tpu.memory_space<vmem>>, vector<32x16xf32>,
    return
  }
}

</mosaic_0001>

<bundles_post_ra>
// kernel: neg.12
= control target key start
LH: loop header
LB: loop body
LE: loop exit
PB: predicated region body
PF: predicated region fallthrough
CT: control target
= control target key end

     0   :  { %s40_s0 = inlined_call_operand.vmem [shape: f32[16,8], index: 0, kind: input, shape index: {}]   ;;  %s41_s1 = inlined_call_operand.vmem [shape: f32[16,8], index: 1, kind: output, shape index: {}]  }
   0x1   :  { %v2_v0 = vld [vmem:[%s40_s0] sm:$0xff]  ;;  %v16_v1 = vld [vmem:[%s40_s0 + $0x8] sm:$0xff] }
   0x2   :  { %v5_v2 = vxor.u32 2147483648, %v2_v0  ;;  %v12_v3 = vxor.u32 2147483648, %v16_v1 }
   0x4   :  { %7 = vst [vmem:[%s41_s1] sm:$0xff] %v5_v2 }
   0x5   :  { %17 = vst [vmem:[%s41_s1 + $0x8] sm:$0xff] %v12_v3 }

// kernel: neg.14
= control target key start
LH: loop header
LB: loop body
LE: loop exit
PB: predicated region body
PF: predicated region fallthrough
CT: control target
= control target key end

     0   :  { %s24_s0 = inlined_call_operand.vmem [shape: f32[16,8], index: 0, kind: input, shape index: {}]   ;;  %s25_s1 = inlined_call_operand.vmem [shape: f32[16,8], index: 1, kind: output, shape index: {}]  }
   0x1   :  { %v2_v0 = vld [vmem:[%s24_s0] sm:$0xff] }
   0x2   :  { %v5_v1 = vxor.u32 2147483648, %v2_v0 }
   0x4   :  { %7 = vst [vmem:[%s25_s1] sm:$0xff] %v5_v1 }

// kernel: neg.10
= control target key start
LH: loop header
LB: loop body
LE: loop exit
PB: predicated region body
PF: predicated region fallthrough
CT: control target
= control target key end

     0   :  { %s24_s0 = inlined_call_operand.vmem [shape: f32[8,16], index: 0, kind: input, shape index: {}]   ;;  %s25_s1 = inlined_call_operand.vmem [shape: f32[8,16], index: 1, kind: output, shape index: {}]  }
   0x1   :  { %v2_v0 = vld [vmem:[%s24_s0] sm:$0xff] }
   0x2   :  { %v5_v1 = vxor.u32 2147483648, %v2_v0 }
   0x4   :  { %7 = vst [vmem:[%s25_s1] sm:$0xff] %v5_v1 }

// kernel: nn_i_forward.1
= control target key start
LH: loop header
LB: loop body
LE: loop exit
PB: predicated region body
PF: predicated region fallthrough
CT: control target
= control target key end

     0   :  { %vm38_vm0 = vcmask 130048   ;;  %vm127_vm1 = vcmask 523264   ;;  %vm205_vm2 = vcmask 261120   ;;  %s615_s1 = inlined_call_operand.vmem [shape: f32[16,32], index: 1, kind: input, shape index: {}]   ;;  %s616_s0 = inlined_call_operand.vmem [shape: f32[32,16], index: 0, kind: input, shape index: {}]   ;;  %s617_s2 = inlined_call_operand.vmem [shape: f32[16,32], index: 2, kind: input, shape index: {}]   ;;  %s618_s3 = inlined_call_operand.vmem [shape: f32[64,64], index: 3, kind: input, shape index: {}]   ;;  %s619_s5 = inlined_call_operand.vmem [shape: f32[32,16], index: 5, kind: input, shape index: {}]   ;;  %s620_s6 = inlined_call_operand.vmem [shape: f32[32,16], index: 6, kind: input, shape index: {}]   ;;  %s621_s4 = inlined_call_operand.vmem [shape: f32[64,32], index: 4, kind: input, shape index: {}]   ;;  %s622_s7 = inlined_call_operand.vmem [shape: f32[32,128], index: 7, kind: input, shape index: {}]   ;;  %s623_s8 = inlined_call_operand.vmem [shape: f32[32,16], index: 8, kind: input, shape index: {}]   ;;  %s624_s9 = inlined_call_operand.vmem [shape: f32[32,16], index: 9, kind: output, shape index: {}]  }
   0x1   :  { %v37_v0 = vld [vmem:[%s615_s1 + $0x8] sm:$0xff]  ;;  %v36_v1 = vld [vmem:[%s615_s1] sm:$0xff]  ;;  %v35_v5 = vld [vmem:[%s616_s0 + $0x18] sm:$0xff] }
   0x2   :  { %393 = vmatpush.msra.mxu1 %v37_v0  ;;  %v33_v2 = vld [vmem:[%s616_s0 + $0x8] sm:$0xff]  ;;  %394 = vmatpush.msra.mxu3 %v37_v0  ;;  %v80_v4 = vld [vmem:[%s617_s2] sm:$0xff]  ;;  %v34_v7 = vld [vmem:[%s616_s0 + $0x10] sm:$0xff] }
   0x3   :  { %v81_v3 = vld [vmem:[%s617_s2 + $0x8] sm:$0xff]  ;;  %65 = vmatpush.msra.mxu0 %v37_v0  ;;  %v32_v6 = vld [vmem:[%s616_s0] sm:$0xff]  ;;  %v113_v18 = vld [vmem:[%s618_s3 + $0x10] sm:$0xff] }
   0x4   :  { %395 = vmatpush.msra.mxu1 %v36_v1  ;;  %396 = vmatpush.msra.mxu3 %v36_v1  ;;  %v111_v16 = vld [vmem:[%s618_s3] sm:$0xff]  ;;  %v112_v17 = vld [vmem:[%s618_s3 + $0x8] sm:$0xff]  ;;  %v114_v19 = vld [vmem:[%s618_s3 + $0x18] sm:$0xff] }
   0x5   :  { %362 = vmatmul.msk.f32.vlgmr.msra.gmra.mxu1 %vm38_vm0, %v33_v2  ;;  %66 = vmatpush.msra.mxu0 %v36_v1  ;;  %v204_v20 = vld [vmem:[%s619_s5 + $0x18] sm:$0xff]  ;;  %v115_v22 = vld [vmem:[%s618_s3 + $0x20] sm:$0xff]  ;;  %v116_v23 = vld [vmem:[%s618_s3 + $0x28] sm:$0xff] }
   0x6   :  { %96 = vmatpush.msrb.mxu1 %v81_v3  ;;  %364 = vmatmul.msk.f32.vlgmr.msra.gmra.mxu3 %vm38_vm0, %v35_v5  ;;  %v274_v21 = vld [vmem:[%s620_s6 + $0x18] sm:$0xff]  ;;  %v117_v24 = vld [vmem:[%s618_s3 + $0x30] sm:$0xff]  ;;  %v202_v28 = vld [vmem:[%s619_s5 + $0x8] sm:$0xff] }
   0x7   :  { %361 = vmatmul.msk.f32.vlgmr.msra.gmra.mxu0 %vm38_vm0, %v32_v6  ;;  %242 = vmatpush.msrb.mxu3 %v204_v20  ;;  %v118_v25 = vld [vmem:[%s618_s3 + $0x38] sm:$0xff]  ;;  %v203_v26 = vld [vmem:[%s619_s5 + $0x10] sm:$0xff]  ;;  %v272_v29 = vld [vmem:[%s620_s6 + $0x8] sm:$0xff] }
   0x8   :  { %97 = vmatpush.msrb.mxu1 %v80_v4  ;;  %287 = vmatpush.msrb.mxu0 %v274_v21  ;;  %v273_v27 = vld [vmem:[%s620_s6 + $0x10] sm:$0xff]  ;;  %v201_v30 = vld [vmem:[%s619_s5] sm:$0xff]  ;;  %v120_v36 = vld [vmem:[%s621_s4 + $0x8] sm:$0xff] }
   0x9   :  { %243 = vmatpush.msrb.mxu3 %v203_v26  ;;  %v271_v31 = vld [vmem:[%s620_s6] sm:$0xff]  ;;  %v121_v40 = vld [vmem:[%s621_s4 + $0x10] sm:$0xff]  ;;  %v122_v44 = vld [vmem:[%s621_s4 + $0x18] sm:$0xff] }
   0xa   :  { %288 = vmatpush.msrb.mxu0 %v273_v27  ;;  %v119_v32 = vld [vmem:[%s621_s4] sm:$0xff]  ;;  %v124_v52 = vld [vmem:[%s621_s4 + $0x28] sm:$0xff]  ;;  %v125_v56 = vld [vmem:[%s621_s4 + $0x30] sm:$0xff] }
   0xb   :  { %244 = vmatpush.msrb.mxu3 %v202_v28  ;;  %v123_v48 = vld [vmem:[%s621_s4 + $0x20] sm:$0xff]  ;;  %v126_v60 = vld [vmem:[%s621_s4 + $0x38] sm:$0xff]  ;;  %v322_v26 = vld [vmem:[%s623_s8 + $0x10] sm:$0xff] }
   0xc   :  { %289 = vmatpush.msrb.mxu0 %v272_v29  ;;  %v320_v20 = vld [vmem:[%s623_s8] sm:$0xff]  ;;  %v323_v29 = vld [vmem:[%s623_s8 + $0x18] sm:$0xff] }
   0xd   :  { %363 = vmatmul.msk.f32.gmra.mxu1 %vm38_vm0, %v34_v7  ;;  %245 = vmatpush.msrb.mxu3 %v201_v30 }
   0xe   :  { %290 = vmatpush.msrb.mxu0 %v271_v31 }
  0x15   :  { %365 = vmatmul.msk.f32.vlgmr.msrb.gmra.mxu1 %vm38_vm0, %v32_v6 }
  0x1d   :  { %366 = vmatmul.msk.f32.gmra.mxu1 %vm38_vm0, %v33_v2 }
  0x25   :  { %367 = vmatmul.msk.f32.gmra.mxu1 %vm38_vm0, %v34_v7 }
  0x2d   :  { %368 = vmatmul.msk.f32.gmra.mxu1 %vm38_vm0, %v35_v5 }
  0x82   :  { %v71_v8 = vpop.f32.mrf.mxu1 }
  0x84   :  { %v68_v15 = vpop.f32.mrf.mxu0 }
  0x89   :  { %v77_v14 = vpop.f32.mrf.mxu3 }
  0x8a   :  { %v74_v9 = vpop.f32.mrf.mxu1 }
  0x92   :  { %v99_v10 = vpop.f32.mrf.mxu1 }
  0x9a   :  { %v102_v11 = vpop.f32.mrf.mxu1 }
  0xa2   :  { %v105_v12 = vpop.f32.mrf.mxu1 }
  0xaa   :  { %v108_v13 = vpop.f32.mrf.mxu1 }
  0xab   :  { %160 = vmatpush.msra.mxu2 %v108_v13 }
  0xad   :  { %161 = vmatpush.msra.mxu2 %v105_v12 }
  0xaf   :  { %162 = vmatpush.msra.mxu2 %v102_v11 }
  0xb1   :  { %163 = vmatpush.msra.mxu2 %v99_v10 }
  0xb3   :  { %164 = vmatpush.msra.mxu2 %v77_v14 }
  0xb5   :  { %165 = vmatpush.msra.mxu2 %v74_v9 }
  0xb7   :  { %166 = vmatpush.msra.mxu2 %v71_v8 }
  0xb9   :  { %167 = vmatpush.msra.mxu2 %v68_v15 }
  0xba   :  { %369 = vmatmul.msk.f32.vlgmr.msra.gmra.mxu2 %vm127_vm1, %v111_v16  ;;  %v316_v16 = vld [vmem:[%s622_s7] sm:$0xff] }
  0xc2   :  { %370 = vmatmul.msk.f32.gmra.mxu2 %vm127_vm1, %v112_v17  ;;  %v317_v17 = vld [vmem:[%s622_s7 + $0x8] sm:$0xff] }
  0xca   :  { %371 = vmatmul.msk.f32.gmra.mxu2 %vm127_vm1, %v113_v18  ;;  %v318_v18 = vld [vmem:[%s622_s7 + $0x10] sm:$0xff] }
  0xd2   :  { %372 = vmatmul.msk.f32.gmra.mxu2 %vm127_vm1, %v114_v19  ;;  %v319_v19 = vld [vmem:[%s622_s7 + $0x18] sm:$0xff] }
  0xda   :  { %373 = vmatmul.msk.f32.gmra.mxu2 %vm127_vm1, %v115_v22 }
  0xe2   :  { %374 = vmatmul.msk.f32.gmra.mxu2 %vm127_vm1, %v116_v23  ;;  %v321_v23 = vld [vmem:[%s623_s8 + $0x8] sm:$0xff] }
  0xea   :  { %375 = vmatmul.msk.f32.gmra.mxu2 %vm127_vm1, %v117_v24 }
  0xf2   :  { %376 = vmatmul.msk.f32.gmra.mxu2 %vm127_vm1, %v118_v25 }
 0x13d   :  { %v169_v33 = vpop.f32.mrf.mxu2 }
 0x13e   :  { %v170_v34 = vadd.f32 %v169_v33, %v119_v32 }
 0x140   :  { %v193_v35 = vmax.f32 %v170_v34, 0.0 }
 0x142   :  { %377 = vmatmul.msk.f32.vlgmr.msrb.gmra.mxu3 %vm205_vm2, %v193_v35  ;;  %385 = vmatmul.msk.f32.vlgmr.msrb.gmra.mxu0 %vm205_vm2, %v193_v35 }
 0x145   :  { %v172_v37 = vpop.f32.mrf.mxu2 }
 0x146   :  { %v173_v38 = vadd.f32 %v172_v37, %v120_v36 }
 0x148   :  { %v194_v39 = vmax.f32 %v173_v38, 0.0 }
 0x14a   :  { %378 = vmatmul.msk.f32.gmra.mxu3 %vm205_vm2, %v194_v39  ;;  %386 = vmatmul.msk.f32.gmra.mxu0 %vm205_vm2, %v194_v39 }
 0x14d   :  { %v175_v41 = vpop.f32.mrf.mxu2 }
 0x14e   :  { %v176_v42 = vadd.f32 %v175_v41, %v121_v40 }
 0x150   :  { %v195_v43 = vmax.f32 %v176_v42, 0.0 }
 0x152   :  { %379 = vmatmul.msk.f32.gmra.mxu3 %vm205_vm2, %v195_v43  ;;  %387 = vmatmul.msk.f32.gmra.mxu0 %vm205_vm2, %v195_v43 }
 0x155   :  { %v178_v45 = vpop.f32.mrf.mxu2 }
 0x156   :  { %v179_v46 = vadd.f32 %v178_v45, %v122_v44 }
 0x158   :  { %v196_v47 = vmax.f32 %v179_v46, 0.0 }
 0x15a   :  { %380 = vmatmul.msk.f32.gmra.mxu3 %vm205_vm2, %v196_v47  ;;  %388 = vmatmul.msk.f32.gmra.mxu0 %vm205_vm2, %v196_v47 }
 0x15d   :  { %v181_v49 = vpop.f32.mrf.mxu2 }
 0x15e   :  { %v182_v50 = vadd.f32 %v181_v49, %v123_v48 }
 0x160   :  { %v197_v51 = vmax.f32 %v182_v50, 0.0 }
 0x162   :  { %381 = vmatmul.msk.f32.gmra.mxu3 %vm205_vm2, %v197_v51  ;;  %389 = vmatmul.msk.f32.gmra.mxu0 %vm205_vm2, %v197_v51 }
 0x165   :  { %v184_v53 = vpop.f32.mrf.mxu2 }
 0x166   :  { %v185_v54 = vadd.f32 %v184_v53, %v124_v52 }
 0x168   :  { %v198_v55 = vmax.f32 %v185_v54, 0.0 }
 0x16a   :  { %382 = vmatmul.msk.f32.gmra.mxu3 %vm205_vm2, %v198_v55  ;;  %390 = vmatmul.msk.f32.gmra.mxu0 %vm205_vm2, %v198_v55 }
 0x16d   :  { %v187_v57 = vpop.f32.mrf.mxu2 }
 0x16e   :  { %v188_v58 = vadd.f32 %v187_v57, %v125_v56 }
 0x170   :  { %v199_v59 = vmax.f32 %v188_v58, 0.0 }
 0x172   :  { %383 = vmatmul.msk.f32.gmra.mxu3 %vm205_vm2, %v199_v59  ;;  %391 = vmatmul.msk.f32.gmra.mxu0 %vm205_vm2, %v199_v59 }
 0x175   :  { %v190_v61 = vpop.f32.mrf.mxu2 }
 0x176   :  { %v191_v62 = vadd.f32 %v190_v61, %v126_v60 }
 0x178   :  { %v200_v63 = vmax.f32 %v191_v62, 0.0 }
 0x17a   :  { %384 = vmatmul.msk.f32.gmra.mxu3 %vm205_vm2, %v200_v63  ;;  %392 = vmatmul.msk.f32.gmra.mxu0 %vm205_vm2, %v200_v63 }
 0x1bf   :  { %v292_v0 = vpop.f32.mrf.mxu0 }
 0x1c5   :  { %v247_v1 = vpop.f32.mrf.mxu3 }
 0x1c7   :  { %v295_v2 = vpop.f32.mrf.mxu0 }
 0x1cd   :  { %v250_v3 = vpop.f32.mrf.mxu3 }
 0x1cf   :  { %v298_v4 = vpop.f32.mrf.mxu0 }
 0x1d5   :  { %v253_v5 = vpop.f32.mrf.mxu3 }
 0x1d7   :  { %v301_v6 = vpop.f32.mrf.mxu0 }
 0x1dd   :  { %v256_v7 = vpop.f32.mrf.mxu3 }
 0x1df   :  { %v304_v8 = vpop.f32.mrf.mxu0 }
 0x1e5   :  { %v259_v10 = vpop.f32.mrf.mxu3 }
 0x1e7   :  { %v307_v9 = vpop.f32.mrf.mxu0 }
 0x1ed   :  { %v262_v12 = vpop.f32.mrf.mxu3 }
 0x1ef   :  { %v310_v11 = vpop.f32.mrf.mxu0 }
 0x1f5   :  { %v265_v14 = vpop.f32.mrf.mxu3 }
 0x1f7   :  { %v313_v13 = vpop.f32.mrf.mxu0 }
 0x1f8   :  { %324 = vmatpush.msra.mxu1 %v313_v13 }
 0x1fa   :  { %325 = vmatpush.msra.mxu1 %v310_v11 }
 0x1fc   :  { %326 = vmatpush.msra.mxu1 %v307_v9 }
 0x1fd   :  { %v268_v15 = vpop.f32.mrf.mxu3 }
 0x1fe   :  { %327 = vmatpush.msra.mxu1 %v304_v8 }
 0x200   :  { %328 = vmatpush.msra.mxu1 %v301_v6 }
 0x202   :  { %329 = vmatpush.msra.mxu1 %v298_v4 }
 0x204   :  { %330 = vmatpush.msra.mxu1 %v295_v2 }
 0x206   :  { %331 = vmatpush.msra.mxu1 %v292_v0 }
 0x208   :  { %332 = vmatpush.msra.mxu1 %v268_v15 }
 0x20a   :  { %333 = vmatpush.msra.mxu1 %v265_v14 }
 0x20c   :  { %334 = vmatpush.msra.mxu1 %v262_v12 }
 0x20e   :  { %335 = vmatpush.msra.mxu1 %v259_v10 }
 0x210   :  { %336 = vmatpush.msra.mxu1 %v256_v7 }
 0x212   :  { %337 = vmatpush.msra.mxu1 %v253_v5 }
 0x214   :  { %338 = vmatpush.msra.mxu1 %v250_v3 }
 0x216   :  { %339 = vmatpush.msra.mxu1 %v247_v1 }
 0x217   :  { %340 = vmatmul.f32.vlgmr.msra.gmra.mxu1 %v316_v16 }
 0x21f   :  { %343 = vmatmul.f32.gmra.mxu1 %v317_v17 }
 0x227   :  { %346 = vmatmul.f32.gmra.mxu1 %v318_v18 }
 0x22f   :  { %349 = vmatmul.f32.gmra.mxu1 %v319_v19 }
 0x294   :  { %v341_v21 = vpop.f32.mrf.mxu1 }
 0x295   :  { %v342_v22 = vadd.f32 %v341_v21, %v320_v20 }
 0x297   :  { %353 = vst.msk [vmem:[%s624_s9] sm:$0xff] %vm38_vm0, %v342_v22 }
 0x29c   :  { %v344_v24 = vpop.f32.mrf.mxu1 }
 0x29d   :  { %v345_v25 = vadd.f32 %v344_v24, %v321_v23 }
 0x29f   :  { %354 = vst.msk [vmem:[%s624_s9 + $0x8] sm:$0xff] %vm38_vm0, %v345_v25 }
 0x2a4   :  { %v347_v27 = vpop.f32.mrf.mxu1 }
 0x2a5   :  { %v348_v28 = vadd.f32 %v347_v27, %v322_v26 }
 0x2a7   :  { %355 = vst.msk [vmem:[%s624_s9 + $0x10] sm:$0xff] %vm38_vm0, %v348_v28 }
 0x2ac   :  { %v350_v30 = vpop.f32.mrf.mxu1 }
 0x2ad   :  { %v351_v31 = vadd.f32 %v350_v30, %v323_v29 }
 0x2af   :  { %356 = vst.msk [vmem:[%s624_s9 + $0x18] sm:$0xff] %vm38_vm0, %v351_v31 }

</bundles_post_ra>
